<compile_context>
chip_gen: v6e
topology: v6e:2x2x1
jax: 0.10.0
libtpu: 0.0.40
codegen_flags: <defaults>
</compile_context>

<pallas_src>
import functools

import jax
import jax.numpy as jnp
from jax.experimental import pallas as pl
from jax.experimental.pallas import tpu as pltpu

_LANE = 128  # lane-dense padded class dimension for the output slab


def _fused_forward_kernel(ids_ref, table_ref, w_comb_ref, b_gate_ref,
                          w_cls_ref, b_cls_ref, o_ref, xh_sc,
                          *, t_steps, s_batch):
    """Embedding gather + LSTM recurrence + classifier, all in one body."""
    n_tok = t_steps * s_batch
    hdim = table_ref.shape[-1]

    # ---- Embedding: gather rows of the (V, 1, H) table; ids come from SMEM.
    #      Rows land in columns [0:H) of the (N, 2H) scratch; columns [H:2H)
    #      are filled with h_{t-1} right before each step's combined matmul.
    #      Out-of-range ids would read garbage rows; inputs are in [0, V).
    for n in range(n_tok):
        tok = ids_ref[n]                                        # scalar int32 (SMEM)
        xh_sc[pl.ds(n, 1), pl.ds(0, hdim)] = table_ref[tok]     # (1, H) row gather

    # ---- Hoist parameter loads out of the (unrolled) time loop.
    w_comb = w_comb_ref[...]        # (2H, 4H)  = [W_ih^T ; W_hh^T]
    b_gate = b_gate_ref[...]        # (1, 4H)   = b_ih + b_hh
    w_cls = w_cls_ref[...]          # (H, 128)  classifier weights, lane padded
    b_cls = b_cls_ref[...]          # (1, 128)

    h = jnp.zeros((s_batch, hdim), jnp.float32)   # register-carried state
    c = jnp.zeros((s_batch, hdim), jnp.float32)

    # ---- LSTM recurrence, PyTorch gate order (i, f, g, o); fully unrolled.
    #      Time axis = B (batch_first=False), "batch" = S.
    for t in range(t_steps):
        row0 = t * s_batch
        # Place h_{t-1} next to x_t so one MXU matmul covers both gate products.
        xh_sc[pl.ds(row0, s_batch), pl.ds(hdim, hdim)] = h
        xh = xh_sc[pl.ds(row0, s_batch), :]                     # (S, 2H)
        gates = jnp.dot(xh, w_comb,
                        preferred_element_type=jnp.float32) + b_gate  # (S, 4H)

        i_g = jax.nn.sigmoid(gates[:, 0 * hdim:1 * hdim])
        f_g = jax.nn.sigmoid(gates[:, 1 * hdim:2 * hdim])
        g_g = jnp.tanh(gates[:, 2 * hdim:3 * hdim])
        o_g = jax.nn.sigmoid(gates[:, 3 * hdim:4 * hdim])

        c = f_g * c + i_g * g_g
        h = o_g * jnp.tanh(c)

        # Fused classifier; lane-dense (S, 128) unmasked store.
        logits = jnp.dot(h, w_cls, preferred_element_type=jnp.float32) + b_cls
        o_ref[pl.ds(row0, s_batch), :] = logits


@jax.jit
def torch_model_forward(params, x_ids):
    b, s = x_ids.shape
    table = params["embedding"]            # (V, 1, H)
    hdim = table.shape[-1]
    w_cls_t = params["w_cls_t"]            # (H, C)
    c_num = w_cls_t.shape[1]

    # Lane-dense padding of the tiny classifier (C=8 -> 128) so the kernel's
    # output stores are full-lane unmasked vst's; sliced off below.
    w_cls_pad = jnp.zeros((hdim, _LANE), jnp.float32).at[:, :c_num].set(w_cls_t)
    b_cls_pad = jnp.zeros((1, _LANE), jnp.float32).at[:, :c_num].set(params["b_cls"])

    n_tok = b * s
    ids_flat = x_ids.reshape(n_tok).astype(jnp.int32)

    kernel = functools.partial(_fused_forward_kernel, t_steps=b, s_batch=s)
    out_pad = pl.pallas_call(
        kernel,
        out_shape=jax.ShapeDtypeStruct((n_tok, _LANE), jnp.float32),
        in_specs=[
            pl.BlockSpec(memory_space=pltpu.MemorySpace.SMEM),   # token ids
            pl.BlockSpec(memory_space=pltpu.MemorySpace.VMEM),   # embedding table
            pl.BlockSpec(memory_space=pltpu.MemorySpace.VMEM),   # combined LSTM weights
            pl.BlockSpec(memory_space=pltpu.MemorySpace.VMEM),   # combined LSTM bias
            pl.BlockSpec(memory_space=pltpu.MemorySpace.VMEM),   # classifier weights
            pl.BlockSpec(memory_space=pltpu.MemorySpace.VMEM),   # classifier bias
        ],
        out_specs=pl.BlockSpec(memory_space=pltpu.MemorySpace.VMEM),
        scratch_shapes=[pltpu.VMEM((n_tok, 2 * hdim), jnp.float32)],  # [x | h_prev]
    )(ids_flat, table, params["w_comb"], params["b_gates"], w_cls_pad, b_cls_pad)

    return out_pad[:, :c_num].reshape(b, s, c_num)
    # TODO(synk): CRF (use_crf=True) and BERT branches not implemented; the
    # reproduced config uses model_type='lstm', use_crf=False, target=None.


def init_params(key, vocab_size_plus_1, hidden, class_num):
    k_emb, k_wih, k_whh, k_bih, k_bhh, k_wc, k_bc = jax.random.split(key, 7)
    emb = jax.random.normal(k_emb, (vocab_size_plus_1, hidden), jnp.float32)
    emb = emb.at[0].set(0.0)            # nn.Embedding padding_idx=0 -> zero row
    bound = 1.0 / jnp.sqrt(jnp.float32(hidden))
    u = lambda k, shp: jax.random.uniform(k, shp, jnp.float32, -bound, bound)
    w_ih = u(k_wih, (4 * hidden, hidden))      # PyTorch weight_ih_l0 (i,f,g,o)
    w_hh = u(k_whh, (4 * hidden, hidden))      # PyTorch weight_hh_l0
    b_ih = u(k_bih, (4 * hidden,))
    b_hh = u(k_bhh, (4 * hidden,))
    w_cls = u(k_wc, (class_num, hidden))
    b_cls = u(k_bc, (class_num,))
    return {
        "embedding": emb[:, None, :],                       # (V, 1, H) row-gather layout
        "w_comb": jnp.concatenate([w_ih.T, w_hh.T], 0),     # (2H, 4H) = [W_ih^T; W_hh^T]
        "b_gates": (b_ih + b_hh).reshape(1, -1),            # (1, 4H)
        "w_cls_t": w_cls.T,                                 # (H, C)
        "b_cls": b_cls.reshape(1, -1),                      # (1, C)
    }


if __name__ == "__main__":
    B, S = 2, 8
    HIDDEN = 32
    VOCAB = 20          # config['vocab_size']
    CLASS_NUM = 8

    key = jax.random.PRNGKey(0)
    k_params, k_ids = jax.random.split(key)
    params = init_params(k_params, VOCAB + 1, HIDDEN, CLASS_NUM)
    x_ids = jax.random.randint(k_ids, (B, S), 0, VOCAB + 1, dtype=jnp.int32)

    logits = torch_model_forward(params, x_ids)
    jax.block_until_ready(logits)
    assert logits.shape == (B, S, CLASS_NUM)
    assert logits.dtype == jnp.float32
    print("KERNEL_OK")
</pallas_src>

<mosaic_0001>
module attributes {stable_mosaic.version = 11 : i64} {
  func.func @_fused_forward_kernel(%arg0: memref<16xi32, #tpu.memory_space<smem>>, %arg1: memref<21x1x32xf32, #tpu.memory_space<vmem>>, %arg2: memref<64x128xf32, #tpu.memory_space<vmem>>, %arg3: memref<1x128xf32, #tpu.memory_space<vmem>>, %arg4: memref<32x128xf32, #tpu.memory_space<vmem>>, %arg5: memref<1x128xf32, #tpu.memory_space<vmem>>, %arg6: memref<16x128xf32, #tpu.memory_space<vmem>>, %arg7: memref<16x64xf32, #tpu.memory_space<vmem>>) attributes {dimension_semantics = [], scalar_prefetch = 0 : i64, scratch_operands = 1 : i64, tpu.core_type = #tpu.core_type<tc>} {
    %c0 = arith.constant 0 : index
    %0 = memref.load %arg0[%c0] : memref<16xi32, #tpu.memory_space<smem>>
    %1 = arith.index_cast %0 : i32 to index
    %c0_0 = arith.constant 0 : index
    %c0_1 = arith.constant 0 : index
    %2 = vector.load %arg1[%1, %c0_0, %c0_1] : memref<21x1x32xf32, #tpu.memory_space<vmem>>, vector<1x1x32xf32>
    %3 = vector.shape_cast %2 : vector<1x1x32xf32> to vector<1x32xf32>
    %c0_2 = arith.constant 0 : index
    %c0_3 = arith.constant 0 : index
    %4 = vector.load %arg7[%c0_2, %c0_3] : memref<16x64xf32, #tpu.memory_space<vmem>>, vector<1x32xf32>
    tpu.vector_store %arg7[%c0_2, %c0_3], %3 {strides = array<i32>} : memref<16x64xf32, #tpu.memory_space<vmem>>, vector<1x32xf32>,
    %c1 = arith.constant 1 : index
    %5 = memref.load %arg0[%c1] : memref<16xi32, #tpu.memory_space<smem>>
    %6 = arith.index_cast %5 : i32 to index
    %c0_4 = arith.constant 0 : index
    %c0_5 = arith.constant 0 : index
    %7 = vector.load %arg1[%6, %c0_4, %c0_5] : memref<21x1x32xf32, #tpu.memory_space<vmem>>, vector<1x1x32xf32>
    %8 = vector.shape_cast %7 : vector<1x1x32xf32> to vector<1x32xf32>
    %c1_6 = arith.constant 1 : index
    %c0_7 = arith.constant 0 : index
    %9 = vector.load %arg7[%c1_6, %c0_7] : memref<16x64xf32, #tpu.memory_space<vmem>>, vector<1x32xf32>
    tpu.vector_store %arg7[%c1_6, %c0_7], %8 {strides = array<i32>} : memref<16x64xf32, #tpu.memory_space<vmem>>, vector<1x32xf32>,
    %c2 = arith.constant 2 : index
    %10 = memref.load %arg0[%c2] : memref<16xi32, #tpu.memory_space<smem>>
    %11 = arith.index_cast %10 : i32 to index
    %c0_8 = arith.constant 0 : index
    %c0_9 = arith.constant 0 : index
    %12 = vector.load %arg1[%11, %c0_8, %c0_9] : memref<21x1x32xf32, #tpu.memory_space<vmem>>, vector<1x1x32xf32>
    %13 = vector.shape_cast %12 : vector<1x1x32xf32> to vector<1x32xf32>
    %c2_10 = arith.constant 2 : index
    %c0_11 = arith.constant 0 : index
    %14 = vector.load %arg7[%c2_10, %c0_11] : memref<16x64xf32, #tpu.memory_space<vmem>>, vector<1x32xf32>
    tpu.vector_store %arg7[%c2_10, %c0_11], %13 {strides = array<i32>} : memref<16x64xf32, #tpu.memory_space<vmem>>, vector<1x32xf32>,
    %c3 = arith.constant 3 : index
    %15 = memref.load %arg0[%c3] : memref<16xi32, #tpu.memory_space<smem>>
    %16 = arith.index_cast %15 : i32 to index
    %c0_12 = arith.constant 0 : index
    %c0_13 = arith.constant 0 : index
    %17 = vector.load %arg1[%16, %c0_12, %c0_13] : memref<21x1x32xf32, #tpu.memory_space<vmem>>, vector<1x1x32xf32>
    %18 = vector.shape_cast %17 : vector<1x1x32xf32> to vector<1x32xf32>
    %c3_14 = arith.constant 3 : index
    %c0_15 = arith.constant 0 : index
    %19 = vector.load %arg7[%c3_14, %c0_15] : memref<16x64xf32, #tpu.memory_space<vmem>>, vector<1x32xf32>
    tpu.vector_store %arg7[%c3_14, %c0_15], %18 {strides = array<i32>} : memref<16x64xf32, #tpu.memory_space<vmem>>, vector<1x32xf32>,
    %c4 = arith.constant 4 : index
    %20 = memref.load %arg0[%c4] : memref<16xi32, #tpu.memory_space<smem>>
    %21 = arith.index_cast %20 : i32 to index
    %c0_16 = arith.constant 0 : index
    %c0_17 = arith.constant 0 : index
    %22 = vector.load %arg1[%21, %c0_16, %c0_17] : memref<21x1x32xf32, #tpu.memory_space<vmem>>, vector<1x1x32xf32>
    %23 = vector.shape_cast %22 : vector<1x1x32xf32> to vector<1x32xf32>
    %c4_18 = arith.constant 4 : index
    %c0_19 = arith.constant 0 : index
    %24 = vector.load %arg7[%c4_18, %c0_19] : memref<16x64xf32, #tpu.memory_space<vmem>>, vector<1x32xf32>
    tpu.vector_store %arg7[%c4_18, %c0_19], %23 {strides = array<i32>} : memref<16x64xf32, #tpu.memory_space<vmem>>, vector<1x32xf32>,
    %c5 = arith.constant 5 : index
    %25 = memref.load %arg0[%c5] : memref<16xi32, #tpu.memory_space<smem>>
    %26 = arith.index_cast %25 : i32 to index
    %c0_20 = arith.constant 0 : index
    %c0_21 = arith.constant 0 : index
    %27 = vector.load %arg1[%26, %c0_20, %c0_21] : memref<21x1x32xf32, #tpu.memory_space<vmem>>, vector<1x1x32xf32>
    %28 = vector.shape_cast %27 : vector<1x1x32xf32> to vector<1x32xf32>
    %c5_22 = arith.constant 5 : index
    %c0_23 = arith.constant 0 : index
    %29 = vector.load %arg7[%c5_22, %c0_23] : memref<16x64xf32, #tpu.memory_space<vmem>>, vector<1x32xf32>
    tpu.vector_store %arg7[%c5_22, %c0_23], %28 {strides = array<i32>} : memref<16x64xf32, #tpu.memory_space<vmem>>, vector<1x32xf32>,
    %c6 = arith.constant 6 : index
    %30 = memref.load %arg0[%c6] : memref<16xi32, #tpu.memory_space<smem>>
    %31 = arith.index_cast %30 : i32 to index
    %c0_24 = arith.constant 0 : index
    %c0_25 = arith.constant 0 : index
    %32 = vector.load %arg1[%31, %c0_24, %c0_25] : memref<21x1x32xf32, #tpu.memory_space<vmem>>, vector<1x1x32xf32>
    %33 = vector.shape_cast %32 : vector<1x1x32xf32> to vector<1x32xf32>
    %c6_26 = arith.constant 6 : index
    %c0_27 = arith.constant 0 : index
    %34 = vector.load %arg7[%c6_26, %c0_27] : memref<16x64xf32, #tpu.memory_space<vmem>>, vector<1x32xf32>
    tpu.vector_store %arg7[%c6_26, %c0_27], %33 {strides = array<i32>} : memref<16x64xf32, #tpu.memory_space<vmem>>, vector<1x32xf32>,
    %c7 = arith.constant 7 : index
    %35 = memref.load %arg0[%c7] : memref<16xi32, #tpu.memory_space<smem>>
    %36 = arith.index_cast %35 : i32 to index
    %c0_28 = arith.constant 0 : index
    %c0_29 = arith.constant 0 : index
    %37 = vector.load %arg1[%36, %c0_28, %c0_29] : memref<21x1x32xf32, #tpu.memory_space<vmem>>, vector<1x1x32xf32>
    %38 = vector.shape_cast %37 : vector<1x1x32xf32> to vector<1x32xf32>
    %c7_30 = arith.constant 7 : index
    %c0_31 = arith.constant 0 : index
    %39 = vector.load %arg7[%c7_30, %c0_31] : memref<16x64xf32, #tpu.memory_space<vmem>>, vector<1x32xf32>
    tpu.vector_store %arg7[%c7_30, %c0_31], %38 {strides = array<i32>} : memref<16x64xf32, #tpu.memory_space<vmem>>, vector<1x32xf32>,
    %c8 = arith.constant 8 : index
    %40 = memref.load %arg0[%c8] : memref<16xi32, #tpu.memory_space<smem>>
    %41 = arith.index_cast %40 : i32 to index
    %c0_32 = arith.constant 0 : index
    %c0_33 = arith.constant 0 : index
    %42 = vector.load %arg1[%41, %c0_32, %c0_33] : memref<21x1x32xf32, #tpu.memory_space<vmem>>, vector<1x1x32xf32>
    %43 = vector.shape_cast %42 : vector<1x1x32xf32> to vector<1x32xf32>
    %c8_34 = arith.constant 8 : index
    %c0_35 = arith.constant 0 : index
    %44 = vector.load %arg7[%c8_34, %c0_35] : memref<16x64xf32, #tpu.memory_space<vmem>>, vector<1x32xf32>
    tpu.vector_store %arg7[%c8_34, %c0_35], %43 {strides = array<i32>} : memref<16x64xf32, #tpu.memory_space<vmem>>, vector<1x32xf32>,
    %c9 = arith.constant 9 : index
    %45 = memref.load %arg0[%c9] : memref<16xi32, #tpu.memory_space<smem>>
    %46 = arith.index_cast %45 : i32 to index
    %c0_36 = arith.constant 0 : index
    %c0_37 = arith.constant 0 : index
    %47 = vector.load %arg1[%46, %c0_36, %c0_37] : memref<21x1x32xf32, #tpu.memory_space<vmem>>, vector<1x1x32xf32>
    %48 = vector.shape_cast %47 : vector<1x1x32xf32> to vector<1x32xf32>
    %c9_38 = arith.constant 9 : index
    %c0_39 = arith.constant 0 : index
    %49 = vector.load %arg7[%c9_38, %c0_39] : memref<16x64xf32, #tpu.memory_space<vmem>>, vector<1x32xf32>
    tpu.vector_store %arg7[%c9_38, %c0_39], %48 {strides = array<i32>} : memref<16x64xf32, #tpu.memory_space<vmem>>, vector<1x32xf32>,
    %c10 = arith.constant 10 : index
    %50 = memref.load %arg0[%c10] : memref<16xi32, #tpu.memory_space<smem>>
    %51 = arith.index_cast %50 : i32 to index
    %c0_40 = arith.constant 0 : index
    %c0_41 = arith.constant 0 : index
    %52 = vector.load %arg1[%51, %c0_40, %c0_41] : memref<21x1x32xf32, #tpu.memory_space<vmem>>, vector<1x1x32xf32>
    %53 = vector.shape_cast %52 : vector<1x1x32xf32> to vector<1x32xf32>
    %c10_42 = arith.constant 10 : index
    %c0_43 = arith.constant 0 : index
    %54 = vector.load %arg7[%c10_42, %c0_43] : memref<16x64xf32, #tpu.memory_space<vmem>>, vector<1x32xf32>
    tpu.vector_store %arg7[%c10_42, %c0_43], %53 {strides = array<i32>} : memref<16x64xf32, #tpu.memory_space<vmem>>, vector<1x32xf32>,
    %c11 = arith.constant 11 : index
    %55 = memref.load %arg0[%c11] : memref<16xi32, #tpu.memory_space<smem>>
    %56 = arith.index_cast %55 : i32 to index
    %c0_44 = arith.constant 0 : index
    %c0_45 = arith.constant 0 : index
    %57 = vector.load %arg1[%56, %c0_44, %c0_45] : memref<21x1x32xf32, #tpu.memory_space<vmem>>, vector<1x1x32xf32>
    %58 = vector.shape_cast %57 : vector<1x1x32xf32> to vector<1x32xf32>
    %c11_46 = arith.constant 11 : index
    %c0_47 = arith.constant 0 : index
    %59 = vector.load %arg7[%c11_46, %c0_47] : memref<16x64xf32, #tpu.memory_space<vmem>>, vector<1x32xf32>
    tpu.vector_store %arg7[%c11_46, %c0_47], %58 {strides = array<i32>} : memref<16x64xf32, #tpu.memory_space<vmem>>, vector<1x32xf32>,
    %c12 = arith.constant 12 : index
    %60 = memref.load %arg0[%c12] : memref<16xi32, #tpu.memory_space<smem>>
    %61 = arith.index_cast %60 : i32 to index
    %c0_48 = arith.constant 0 : index
    %c0_49 = arith.constant 0 : index
    %62 = vector.load %arg1[%61, %c0_48, %c0_49] : memref<21x1x32xf32, #tpu.memory_space<vmem>>, vector<1x1x32xf32>
    %63 = vector.shape_cast %62 : vector<1x1x32xf32> to vector<1x32xf32>
    %c12_50 = arith.constant 12 : index
    %c0_51 = arith.constant 0 : index
    %64 = vector.load %arg7[%c12_50, %c0_51] : memref<16x64xf32, #tpu.memory_space<vmem>>, vector<1x32xf32>
    tpu.vector_store %arg7[%c12_50, %c0_51], %63 {strides = array<i32>} : memref<16x64xf32, #tpu.memory_space<vmem>>, vector<1x32xf32>,
    %c13 = arith.constant 13 : index
    %65 = memref.load %arg0[%c13] : memref<16xi32, #tpu.memory_space<smem>>
    %66 = arith.index_cast %65 : i32 to index
    %c0_52 = arith.constant 0 : index
    %c0_53 = arith.constant 0 : index
    %67 = vector.load %arg1[%66, %c0_52, %c0_53] : memref<21x1x32xf32, #tpu.memory_space<vmem>>, vector<1x1x32xf32>
    %68 = vector.shape_cast %67 : vector<1x1x32xf32> to vector<1x32xf32>
    %c13_54 = arith.constant 13 : index
    %c0_55 = arith.constant 0 : index
    %69 = vector.load %arg7[%c13_54, %c0_55] : memref<16x64xf32, #tpu.memory_space<vmem>>, vector<1x32xf32>
    tpu.vector_store %arg7[%c13_54, %c0_55], %68 {strides = array<i32>} : memref<16x64xf32, #tpu.memory_space<vmem>>, vector<1x32xf32>,
    %c14 = arith.constant 14 : index
    %70 = memref.load %arg0[%c14] : memref<16xi32, #tpu.memory_space<smem>>
    %71 = arith.index_cast %70 : i32 to index
    %c0_56 = arith.constant 0 : index
    %c0_57 = arith.constant 0 : index
    %72 = vector.load %arg1[%71, %c0_56, %c0_57] : memref<21x1x32xf32, #tpu.memory_space<vmem>>, vector<1x1x32xf32>
    %73 = vector.shape_cast %72 : vector<1x1x32xf32> to vector<1x32xf32>
    %c14_58 = arith.constant 14 : index
    %c0_59 = arith.constant 0 : index
    %74 = vector.load %arg7[%c14_58, %c0_59] : memref<16x64xf32, #tpu.memory_space<vmem>>, vector<1x32xf32>
    tpu.vector_store %arg7[%c14_58, %c0_59], %73 {strides = array<i32>} : memref<16x64xf32, #tpu.memory_space<vmem>>, vector<1x32xf32>,
    %c15 = arith.constant 15 : index
    %75 = memref.load %arg0[%c15] : memref<16xi32, #tpu.memory_space<smem>>
    %76 = arith.index_cast %75 : i32 to index
    %c0_60 = arith.constant 0 : index
    %c0_61 = arith.constant 0 : index
    %77 = vector.load %arg1[%76, %c0_60, %c0_61] : memref<21x1x32xf32, #tpu.memory_space<vmem>>, vector<1x1x32xf32>
    %78 = vector.shape_cast %77 : vector<1x1x32xf32> to vector<1x32xf32>
    %c15_62 = arith.constant 15 : index
    %c0_63 = arith.constant 0 : index
    %79 = vector.load %arg7[%c15_62, %c0_63] : memref<16x64xf32, #tpu.memory_space<vmem>>, vector<1x32xf32>
    tpu.vector_store %arg7[%c15_62, %c0_63], %78 {strides = array<i32>} : memref<16x64xf32, #tpu.memory_space<vmem>>, vector<1x32xf32>,
    %c0_64 = arith.constant 0 : index
    %c0_65 = arith.constant 0 : index
    %80 = vector.load %arg2[%c0_64, %c0_65] : memref<64x128xf32, #tpu.memory_space<vmem>>, vector<64x128xf32>
    %c0_66 = arith.constant 0 : index
    %c0_67 = arith.constant 0 : index
    %81 = vector.load %arg3[%c0_66, %c0_67] : memref<1x128xf32, #tpu.memory_space<vmem>>, vector<1x128xf32>
    %c0_68 = arith.constant 0 : index
    %c0_69 = arith.constant 0 : index
    %82 = vector.load %arg4[%c0_68, %c0_69] : memref<32x128xf32, #tpu.memory_space<vmem>>, vector<32x128xf32>
    %c0_70 = arith.constant 0 : index
    %c0_71 = arith.constant 0 : index
    %83 = vector.load %arg5[%c0_70, %c0_71] : memref<1x128xf32, #tpu.memory_space<vmem>>, vector<1x128xf32>
    %cst = arith.constant 0.000000e+00 : f32
    %84 = vector.broadcast %cst : f32 to vector<8x32xf32>
    %cst_72 = arith.constant 0.000000e+00 : f32
    %85 = vector.broadcast %cst_72 : f32 to vector<8x32xf32>
    %c0_73 = arith.constant 0 : index
    %c32 = arith.constant 32 : index
    %86 = vector.load %arg7[%c0_73, %c32] : memref<16x64xf32, #tpu.memory_space<vmem>>, vector<8x32xf32>
    tpu.vector_store %arg7[%c0_73, %c32], %84 {strides = array<i32>} : memref<16x64xf32, #tpu.memory_space<vmem>>, vector<8x32xf32>,
    %c0_74 = arith.constant 0 : index
    %c0_75 = arith.constant 0 : index
    %87 = vector.load %arg7[%c0_74, %c0_75] : memref<16x64xf32, #tpu.memory_space<vmem>>, vector<8x64xf32>
    %cst_76 = arith.constant dense<0.000000e+00> : vector<8x128xf32>
    %88 = tpu.matmul %87, %80, %cst_76 {dimension_numbers = #tpu.dot_dimension_numbers<[1], [0], [0], [1], [0, 0, 1, 1], [], []>} : vector<8x64xf32>, vector<64x128xf32>, vector<8x128xf32> -> vector<8x128xf32>
    %89 = vector.broadcast %81 : vector<1x128xf32> to vector<8x128xf32>
    %90 = arith.addf %88, %89 : vector<8x128xf32>
    %91 = vector.extract_strided_slice %90 {offsets = [0, 0], sizes = [8, 32], strides = [1, 1]} : vector<8x128xf32> to vector<8x32xf32>
    %92 = arith.negf %91 : vector<8x32xf32>
    %93 = math.exp %92 : vector<8x32xf32>
    %cst_77 = arith.constant 1.000000e+00 : f32
    %94 = vector.broadcast %cst_77 : f32 to vector<8x32xf32>
    %95 = arith.addf %94, %93 : vector<8x32xf32>
    %96 = arith.divf %94, %95 : vector<8x32xf32>
    %97 = vector.extract_strided_slice %90 {offsets = [0, 32], sizes = [8, 32], strides = [1, 1]} : vector<8x128xf32> to vector<8x32xf32>
    %98 = arith.negf %97 : vector<8x32xf32>
    %99 = math.exp %98 : vector<8x32xf32>
    %cst_78 = arith.constant 1.000000e+00 : f32
    %100 = vector.broadcast %cst_78 : f32 to vector<8x32xf32>
    %101 = arith.addf %100, %99 : vector<8x32xf32>
    %102 = arith.divf %100, %101 : vector<8x32xf32>
    %103 = vector.extract_strided_slice %90 {offsets = [0, 64], sizes = [8, 32], strides = [1, 1]} : vector<8x128xf32> to vector<8x32xf32>
    %104 = math.tanh %103 : vector<8x32xf32>
    %105 = vector.extract_strided_slice %90 {offsets = [0, 96], sizes = [8, 32], strides = [1, 1]} : vector<8x128xf32> to vector<8x32xf32>
    %106 = arith.negf %105 : vector<8x32xf32>
    %107 = math.exp %106 : vector<8x32xf32>
    %cst_79 = arith.constant 1.000000e+00 : f32
    %108 = vector.broadcast %cst_79 : f32 to vector<8x32xf32>
    %109 = arith.addf %108, %107 : vector<8x32xf32>
    %110 = arith.divf %108, %109 : vector<8x32xf32>
    %111 = arith.mulf %102, %85 : vector<8x32xf32>
    %112 = arith.mulf %96, %104 : vector<8x32xf32>
    %113 = arith.addf %111, %112 : vector<8x32xf32>
    %114 = math.tanh %113 : vector<8x32xf32>
    %115 = arith.mulf %110, %114 : vector<8x32xf32>
    %cst_80 = arith.constant dense<0.000000e+00> : vector<8x128xf32>
    %116 = tpu.matmul %115, %82, %cst_80 {dimension_numbers = #tpu.dot_dimension_numbers<[1], [0], [0], [1], [0, 0, 1, 1], [], []>} : vector<8x32xf32>, vector<32x128xf32>, vector<8x128xf32> -> vector<8x128xf32>
    %117 = vector.broadcast %83 : vector<1x128xf32> to vector<8x128xf32>
    %118 = arith.addf %116, %117 : vector<8x128xf32>
    %c0_81 = arith.constant 0 : index
    %c0_82 = arith.constant 0 : index
    %119 = vector.load %arg6[%c0_81, %c0_82] : memref<16x128xf32, #tpu.memory_space<vmem>>, vector<8x128xf32>
    tpu.vector_store %arg6[%c0_81, %c0_82], %118 {strides = array<i32>} : memref<16x128xf32, #tpu.memory_space<vmem>>, vector<8x128xf32>,
    %c8_83 = arith.constant 8 : index
    %c32_84 = arith.constant 32 : index
    %120 = vector.load %arg7[%c8_83, %c32_84] : memref<16x64xf32, #tpu.memory_space<vmem>>, vector<8x32xf32>
    tpu.vector_store %arg7[%c8_83, %c32_84], %115 {strides = array<i32>} : memref<16x64xf32, #tpu.memory_space<vmem>>, vector<8x32xf32>,
    %c8_85 = arith.constant 8 : index
    %c0_86 = arith.constant 0 : index
    %121 = vector.load %arg7[%c8_85, %c0_86] : memref<16x64xf32, #tpu.memory_space<vmem>>, vector<8x64xf32>
    %cst_87 = arith.constant dense<0.000000e+00> : vector<8x128xf32>
    %122 = tpu.matmul %121, %80, %cst_87 {dimension_numbers = #tpu.dot_dimension_numbers<[1], [0], [0], [1], [0, 0, 1, 1], [], []>} : vector<8x64xf32>, vector<64x128xf32>, vector<8x128xf32> -> vector<8x128xf32>
    %123 = vector.broadcast %81 : vector<1x128xf32> to vector<8x128xf32>
    %124 = arith.addf %122, %123 : vector<8x128xf32>
    %125 = vector.extract_strided_slice %124 {offsets = [0, 0], sizes = [8, 32], strides = [1, 1]} : vector<8x128xf32> to vector<8x32xf32>
    %126 = arith.negf %125 : vector<8x32xf32>
    %127 = math.exp %126 : vector<8x32xf32>
    %cst_88 = arith.constant 1.000000e+00 : f32
    %128 = vector.broadcast %cst_88 : f32 to vector<8x32xf32>
    %129 = arith.addf %128, %127 : vector<8x32xf32>
    %130 = arith.divf %128, %129 : vector<8x32xf32>
    %131 = vector.extract_strided_slice %124 {offsets = [0, 32], sizes = [8, 32], strides = [1, 1]} : vector<8x128xf32> to vector<8x32xf32>
    %132 = arith.negf %131 : vector<8x32xf32>
    %133 = math.exp %132 : vector<8x32xf32>
    %cst_89 = arith.constant 1.000000e+00 : f32
    %134 = vector.broadcast %cst_89 : f32 to vector<8x32xf32>
    %135 = arith.addf %134, %133 : vector<8x32xf32>
    %136 = arith.divf %134, %135 : vector<8x32xf32>
    %137 = vector.extract_strided_slice %124 {offsets = [0, 64], sizes = [8, 32], strides = [1, 1]} : vector<8x128xf32> to vector<8x32xf32>
    %138 = math.tanh %137 : vector<8x32xf32>
    %139 = vector.extract_strided_slice %124 {offsets = [0, 96], sizes = [8, 32], strides = [1, 1]} : vector<8x128xf32> to vector<8x32xf32>
    %140 = arith.negf %139 : vector<8x32xf32>
    %141 = math.exp %140 : vector<8x32xf32>
    %cst_90 = arith.constant 1.000000e+00 : f32
    %142 = vector.broadcast %cst_90 : f32 to vector<8x32xf32>
    %143 = arith.addf %142, %141 : vector<8x32xf32>
    %144 = arith.divf %142, %143 : vector<8x32xf32>
    %145 = arith.mulf %136, %113 : vector<8x32xf32>
    %146 = arith.mulf %130, %138 : vector<8x32xf32>
    %147 = arith.addf %145, %146 : vector<8x32xf32>
    %148 = math.tanh %147 : vector<8x32xf32>
    %149 = arith.mulf %144, %148 : vector<8x32xf32>
    %cst_91 = arith.constant dense<0.000000e+00> : vector<8x128xf32>
    %150 = tpu.matmul %149, %82, %cst_91 {dimension_numbers = #tpu.dot_dimension_numbers<[1], [0], [0], [1], [0, 0, 1, 1], [], []>} : vector<8x32xf32>, vector<32x128xf32>, vector<8x128xf32> -> vector<8x128xf32>
    %151 = vector.broadcast %83 : vector<1x128xf32> to vector<8x128xf32>
    %152 = arith.addf %150, %151 : vector<8x128xf32>
    %c8_92 = arith.constant 8 : index
    %c0_93 = arith.constant 0 : index
    %153 = vector.load %arg6[%c8_92, %c0_93] : memref<16x128xf32, #tpu.memory_space<vmem>>, vector<8x128xf32>
    tpu.vector_store %arg6[%c8_92, %c0_93], %152 {strides = array<i32>} : memref<16x128xf32, #tpu.memory_space<vmem>>, vector<8x128xf32>,
    return
  }
}

</mosaic_0001>

<bundles_post_ra>
// kernel: torch_model_forward.1
= control target key start
LH: loop header
LB: loop body
LE: loop exit
PB: predicated region body
PF: predicated region fallthrough
CT: control target
= control target key end

     0   :  { %11 = vsyncpa [#allocation4], 0  ;;  %s907_s0 = inlined_call_operand.vmem [shape: s32[16], index: 0, kind: input, shape index: {}]   ;;  %s908_s1 = inlined_call_operand.vmem [shape: f32[21,1,32], index: 1, kind: input, shape index: {}]   ;;  %s909_s2 = inlined_call_operand.vmem [shape: f32[64,128], index: 2, kind: input, shape index: {}]   ;;  %s910_s3 = inlined_call_operand.vmem [shape: f32[1,128], index: 3, kind: input, shape index: {}]   ;;  %s911_s4 = inlined_call_operand.vmem [shape: f32[32,128], index: 4, kind: input, shape index: {}]   ;;  %s912_s5 = inlined_call_operand.vmem [shape: f32[1,128], index: 5, kind: input, shape index: {}]   ;;  %s913_s6 = inlined_call_operand.vmem [shape: f32[16,128], index: 6, kind: output, shape index: {}]  }
   0x1   :  { %s18_s23 = sshll.u32 %s907_s0, 4  ;;  %s19_s23 = int_to_ptr.vmem [resolvable:$true] %s18_s23 }
   0x2   :  { %s636_s24 = scalar_lea.vmem %s19_s23, 16  ;;  %p641_p1 = scmp.lt.s32.totalorder %s19_s23, %s19_s23 }
   0x3   :  { %p637_p0 = scmp.ne.s32.totalorder %s19_s23, %s636_s24  ;;  %p642_p2 = scmp.lt.s32.totalorder %s636_s24, %s636_s24 }
   0x5   :  { %p643_p3 = por %p642_p2, %p641_p1 }
   0x7   :  { %p644_p4 = pnand %p643_p3, %p637_p0 }
   0x9   :  { %647 = shalt.err (!%p644_p4)
}
   0xa   :  { %s650_s25 = smov [#allocation3]  }
   0xb   :  { %21 = dma.vmem_to_smem %s19_s23, 16, %s650_s25, [#allocation4]  }
   0xc   :  { %648 = dma.done.wait [#allocation4], 16  }
   0xd   :  { %649 = vsyncadd [#allocation4], 4294967280 }
   0xe   :  { %35 = sfence }
   0xf   :  { %v696_v0 = vld [vmem:[%s909_s2 + $0x38] sm:$0xff]  ;;  %v651_v1 = vmov 0.0   ;;  %v702_v2 = vld [vmem:[%s909_s2 + $0x30] sm:$0xff]  ;;  %vm652_vm0 = vmmov 0   ;;  %s36_s29 = sld [smem:[#allocation3]]  ;;  %v712_v3 = vld [vmem:[%s909_s2 + $0x28] sm:$0xff] }
  0x10   :  { %555 = vmatprep.subr.mxu0 %v651_v1  ;;  %571 = vmatprep.mubr.msk.f32.mxu0 %vm652_vm0, %v651_v1  ;;  %s504_s30 = sld [smem:[#allocation3 + $0x1]]  ;;  %v721_v4 = vld [vmem:[%s909_s2 + $0x20] sm:$0xff]  ;;  %vm39_vm1 = vcmask 253952   ;;  %v730_v5 = vld [vmem:[%s909_s2 + $0x18] sm:$0xff]  ;;  %v747_v7 = vld [vmem:[%s909_s2 + $0x10] sm:$0xff]  ;;  %vm115_vm2 = vcmask 523520  }
  0x11   :  { %556 = vmatpush3.msra.mxu0 %v696_v0  ;;  %574 = vmatprep.subr.mxu1 %v651_v1  ;;  %s505_s9 = sld [smem:[#allocation3 + $0x2]]  ;;  %v762_v10 = vld [vmem:[%s909_s2 + $0x8] sm:$0xff]  ;;  %v778_v13 = vld [vmem:[%s909_s2] sm:$0xff]  ;;  %vm124_vm3 = vcmask 523264   ;;  %v113_v32 = vld [vmem:[%s911_s4 + $0x18] sm:$0xff]  ;;  %vm231_vm4 = vcmask 261120  }
  0x12   :  { %557 = vmatprep.subr.mxu0 %v651_v1  ;;  %582 = vmatprep.mubr.msk.f32.mxu1 %vm652_vm0, %v651_v1  ;;  %s506_s10 = sld [smem:[#allocation3 + $0x3]]  ;;  %v804_v18 = vld [vmem:[%s910_s3] ss:$0 sm:$0xff]  ;;  %s654_s3 = smov 32   ;;  %v112_v33 = vld [vmem:[%s911_s4 + $0x10] sm:$0xff]  ;;  %v111_v34 = vld [vmem:[%s911_s4 + $0x8] sm:$0xff] }
  0x13   :  { %558 = vmatpush3.msra.mxu0 %v702_v2  ;;  %s507_s13 = sld [smem:[#allocation3 + $0x4]]  ;;  %575 = vmatpush3.msra.mxu1 %v113_v32  ;;  %v110_v35 = vld [vmem:[%s911_s4] sm:$0xff] }
  0x14   :  { %559 = vmatprep.subr.mxu0 %v651_v1  ;;  %s724_s14 = sld [smem:[#allocation3 + $0x5]]  ;;  %576 = vmatprep.subr.mxu1 %v651_v1  ;;  %v522_v50 = vld [vmem:[%s912_s5] ss:$0 sm:$0xff] }
  0x15   :  { %560 = vmatpush3.msra.mxu0 %v712_v3  ;;  %s37_s19 = scalar_lea.vmem %s908_s1, %s36_s29  ;;  %s735_s20 = sld [smem:[#allocation3 + $0x6]]  ;;  %577 = vmatpush3.msra.mxu1 %v112_v33 }
  0x16   :  { %561 = vmatprep.subr.mxu0 %v651_v1  ;;  %v38_v6 = vld [vmem:[%s37_s19] sm:$0x1]  ;;  %s42_s23 = scalar_lea.vmem %s908_s1, %s504_s30  ;;  %s741_s24 = sld [smem:[#allocation3 + $0x7]]  ;;  %578 = vmatprep.subr.mxu1 %v651_v1 }
  0x17   :  { %562 = vmatpush3.msra.mxu0 %v721_v4  ;;  %40 = vst.msk [vmem:[#allocation2] sm:$0x1] %vm39_vm1, %v38_v6  ;;  %v43_v8 = vld [vmem:[%s42_s23] sm:$0x1]  ;;  %s46_s28 = scalar_lea.vmem %s908_s1, %s505_s9  ;;  %s511_s29 = sld [smem:[#allocation3 + $0x8]]  ;;  %579 = vmatpush3.msra.mxu1 %v111_v34 }
  0x18   :  { %563 = vmatprep.subr.mxu0 %v651_v1  ;;  %44 = vst.msk [vmem:[#allocation2 + $0x1] sm:$0x1] %vm39_vm1, %v43_v8  ;;  %v47_v9 = vld [vmem:[%s46_s28] sm:$0x1]  ;;  %s50_s7 = scalar_lea.vmem %s908_s1, %s506_s10  ;;  %s512_s30 = sld [smem:[#allocation3 + $0x9]]  ;;  %580 = vmatprep.subr.mxu1 %v651_v1 }
  0x19   :  { %564 = vmatpush3.msra.mxu0 %v730_v5  ;;  %48 = vst.msk [vmem:[#allocation2 + $0x2] sm:$0x1] %vm39_vm1, %v47_v9  ;;  %v51_v11 = vld [vmem:[%s50_s7] sm:$0x1]  ;;  %s54_s15 = scalar_lea.vmem %s908_s1, %s507_s13  ;;  %s513_s11 = sld [smem:[#allocation3 + $0xa]]  ;;  %581 = vmatpush3.msra.mxu1 %v110_v35 }
  0x1a   :  { %565 = vmatprep.subr.mxu0 %v651_v1  ;;  %52 = vst.msk [vmem:[#allocation2 + $0x3] sm:$0x1] %vm39_vm1, %v51_v11  ;;  %v55_v12 = vld [vmem:[%s54_s15] sm:$0x1]  ;;  %s58_s17 = scalar_lea.vmem %s908_s1, %s724_s14  ;;  %s514_s9 = sld [smem:[#allocation3 + $0xb]]  ;;  %585 = vmatprep.subr.mxu1 %v651_v1 }
  0x1b   :  { %566 = vmatpush3.msra.mxu0 %v747_v7  ;;  %56 = vst.msk [vmem:[#allocation2 + $0x4] sm:$0x1] %vm39_vm1, %v55_v12  ;;  %v59_v14 = vld [vmem:[%s58_s17] sm:$0x1]  ;;  %s62_s22 = scalar_lea.vmem %s908_s1, %s735_s20  ;;  %s515_s10 = sld [smem:[#allocation3 + $0xc]] }
  0x1c   :  { %567 = vmatprep.subr.mxu0 %v651_v1  ;;  %60 = vst.msk [vmem:[#allocation2 + $0x5] sm:$0x1] %vm39_vm1, %v59_v14  ;;  %v63_v15 = vld [vmem:[%s62_s22] sm:$0x1]  ;;  %s66_s25 = scalar_lea.vmem %s908_s1, %s741_s24  ;;  %s653_s24 = smov 64  }
  0x1d   :  { %568 = vmatpush3.msra.mxu0 %v762_v10  ;;  %64 = vst.msk [vmem:[#allocation2 + $0x6] sm:$0x1] %vm39_vm1, %v63_v15  ;;  %v67_v16 = vld [vmem:[%s66_s25] sm:$0x1]  ;;  %s516_s16 = sld [smem:[#allocation3 + $0xd]]  ;;  %s70_s19 = scalar_lea.vmem %s908_s1, %s511_s29 }
  0x1e   :  { %569 = vmatprep.subr.mxu0 %v651_v1  ;;  %68 = vst.msk [vmem:[#allocation2 + $0x7] sm:$0x1] %vm39_vm1, %v67_v16  ;;  %s517_s13 = sld [smem:[#allocation3 + $0xe]]  ;;  %v71_v36 = vld [vmem:[%s70_s19] sm:$0x1]  ;;  %s74_s4 = scalar_lea.vmem %s908_s1, %s512_s30 }
  0x1f   :  { %570 = vmatpush3.msra.mxu0 %v778_v13  ;;  %116 = vst.msk [vmem:[#allocation2] sm:$0xff] %vm115_vm2, %v651_v1  ;;  %s518_s14 = sld [smem:[#allocation3 + $0xf]]  ;;  %v75_v37 = vld [vmem:[%s74_s4] sm:$0x1]  ;;  %s78_s2 = scalar_lea.vmem %s908_s1, %s513_s11 }
  0x20   :  { %604 = vmatprep.subr.mxu0 %v651_v1  ;;  %72 = vst.msk [vmem:[#allocation2 + $0x8] sm:$0x1] %vm39_vm1, %v71_v36  ;;  %76 = vst.msk [vmem:[#allocation2 + $0x9] sm:$0x1] %vm39_vm1, %v75_v37  ;;  %v79_v38 = vld [vmem:[%s78_s2] sm:$0x1]  ;;  %s82_s27 = scalar_lea.vmem %s908_s1, %s514_s9 }
  0x21   :  { %80 = vst.msk [vmem:[#allocation2 + $0xa] sm:$0x1] %vm39_vm1, %v79_v38  ;;  %v83_v40 = vld [vmem:[%s82_s27] sm:$0x1]  ;;  %s86_s29 = scalar_lea.vmem %s908_s1, %s515_s10 }
  0x22   :  { %84 = vst.msk [vmem:[#allocation2 + $0xb] sm:$0x1] %vm39_vm1, %v83_v40  ;;  %v87_v41 = vld [vmem:[%s86_s29] sm:$0x1] }
  0x23   :  { %s90_s8 = scalar_lea.vmem %s908_s1, %s516_s16  ;;  %88 = vst.msk [vmem:[#allocation2 + $0xc] sm:$0x1] %vm39_vm1, %v87_v41 }
  0x24   :  { %v91_v42 = vld [vmem:[%s90_s8] sm:$0x1]  ;;  %s94_s12 = scalar_lea.vmem %s908_s1, %s517_s13 }
  0x25   :  { %92 = vst.msk [vmem:[#allocation2 + $0xd] sm:$0x1] %vm39_vm1, %v91_v42  ;;  %v95_v43 = vld [vmem:[%s94_s12] sm:$0x1]  ;;  %s98_s17 = scalar_lea.vmem %s908_s1, %s518_s14 }
  0x26   :  { %v117_v17 = vld [vmem:[#allocation2] sm:$0xff]  ;;  %96 = vst.msk [vmem:[#allocation2 + $0xe] sm:$0x1] %vm39_vm1, %v95_v43 }
  0x27   :  { %572 = vmatmul.mubr.msk.f32.vlgmr.msra.gmra.mxu0 %vm124_vm3, %v117_v17  ;;  %v99_v44 = vld [vmem:[%s98_s17] sm:$0x1] }
  0x28   :  { %612 = vmatprep.mubr.msk.f32.mxu0 %vm652_vm0, %v651_v1  ;;  %605 = vmatpush3.msra.mxu0 %v113_v32  ;;  %100 = vst.msk [vmem:[#allocation2 + $0xf] sm:$0x1] %vm39_vm1, %v99_v44 }
  0x29   :  { %606 = vmatprep.subr.mxu0 %v651_v1 }
  0x2a   :  { %607 = vmatpush3.msra.mxu0 %v112_v33 }
  0x2b   :  { %608 = vmatprep.subr.mxu0 %v651_v1 }
  0x2c   :  { %609 = vmatpush3.msra.mxu0 %v111_v34 }
  0x2d   :  { %610 = vmatprep.subr.mxu0 %v651_v1 }
  0x2e   :  { %611 = vmatpush3.msra.mxu0 %v110_v35 }
  0xe7   :  { %v194_v19 = vpop.f32.mrf.mxu0 }
  0xe8   :  { %v195_v20 = vadd.f32 %v804_v18, %v194_v19 }
  0xe9   :  { %v573_v21 = vpop.f32.mrf.mxu0 }
  0xea   :  { %620 = vtanh.f32 %v195_v20  ;;  %v521_v23 = vmul.f32 -1.442695, %v195_v20 }
  0xec   :  { %622 = vpow2.f32 %v521_v23 }
  0xf7   :  { %v621_v22 = vpop.eup %620 }
  0xf8   :  { %207 = vrot.lane.b32.xlu0 %v621_v22, %s653_s24 }
  0xf9   :  { %v623_v24 = vpop.eup %622 }
  0xfa   :  { %v201_v25 = vadd.f32 1.0, %v623_v24 }
  0xfc   :  { %624 = vrcp.f32 %v201_v25 }
 0x109   :  { %v808_v26 = vpop.eup %624 }
 0x10a   :  { %v205_v29 = vmul.f32 0.0, %v808_v26 }
 0x16a   :  { %v208_v27 = vpop.permute.xlu0 %207 }
 0x16b   :  { %v210_v28 = vmul.f32 %v808_v26, %v208_v27 }
 0x16d   :  { %212 = vrot.lane.b32.xlu0 %v210_v28, %s654_s3 }
 0x1df   :  { %v213_v30 = vpop.permute.xlu0 %212 }
 0x1e0   :  { %v813_v31 = vadd.f32 %v213_v30, %v205_v29 }
 0x1e2   :  { %626 = vtanh.f32 %v813_v31 }
 0x1ef   :  { %v627_v39 = vpop.eup %626 }
 0x1f0   :  { %218 = vrot.lane.b32.xlu1 %v627_v39, %s653_s24 }
 0x262   :  { %v219_v45 = vpop.permute.xlu1 %218 }
 0x263   :  { %v221_v46 = vmul.f32 %v808_v26, %v219_v45 }
 0x265   :  { %305 = vrot.lane.b32.xlu0 %v221_v46, %s653_s24  ;;  %229 = vrot.lane.b32.xlu1 %v221_v46, %s654_s3 }
 0x2d7   :  { %v306_v47 = vpop.permute.xlu0 %305  ;;  %v230_v48 = vpop.permute.xlu1 %229 }
 0x2d8   :  { %308 = vst.msk [vmem:[#allocation2 + $0x8] sm:$0xff] %vm115_vm2, %v306_v47  ;;  %583 = vmatmul.mubr.msk.f32.vlgmr.msra.gmra.mxu1 %vm231_vm4, %v230_v48 }
 0x2d9   :  { %586 = vmatpush3.msra.mxu1 %v696_v0  ;;  %601 = vmatprep.mubr.msk.f32.mxu1 %vm652_vm0, %v651_v1 }
 0x2da   :  { %587 = vmatprep.subr.mxu1 %v651_v1 }
 0x2db   :  { %588 = vmatpush3.msra.mxu1 %v702_v2 }
 0x2dc   :  { %589 = vmatprep.subr.mxu1 %v651_v1 }
 0x2dd   :  { %590 = vmatpush3.msra.mxu1 %v712_v3 }
 0x2de   :  { %591 = vmatprep.subr.mxu1 %v651_v1 }
 0x2df   :  { %592 = vmatpush3.msra.mxu1 %v721_v4  ;;  %v309_v49 = vld [vmem:[#allocation2 + $0x8] sm:$0xff] }
 0x2e0   :  { %593 = vmatprep.subr.mxu1 %v651_v1 }
 0x2e1   :  { %594 = vmatpush3.msra.mxu1 %v730_v5 }
 0x2e2   :  { %595 = vmatprep.subr.mxu1 %v651_v1 }
 0x2e3   :  { %596 = vmatpush3.msra.mxu1 %v747_v7 }
 0x2e4   :  { %597 = vmatprep.subr.mxu1 %v651_v1 }
 0x2e5   :  { %598 = vmatpush3.msra.mxu1 %v762_v10 }
 0x2e6   :  { %599 = vmatprep.subr.mxu1 %v651_v1 }
 0x2e7   :  { %600 = vmatpush3.msra.mxu1 %v778_v13 }
 0x2e8   :  { %602 = vmatmul.mubr.msk.f32.vlgmr.msra.gmra.mxu1 %vm124_vm3, %v309_v49 }
 0x398   :  { %v300_v51 = vpop.f32.mrf.mxu1 }
 0x399   :  { %v301_v52 = vadd.f32 %v522_v50, %v300_v51 }
 0x39a   :  { %v584_v53 = vpop.f32.mrf.mxu1 }
 0x39b   :  { %304 = vst [vmem:[%s913_s6] sm:$0xff] %v301_v52 }
 0x3a8   :  { %v379_v54 = vpop.f32.mrf.mxu1 }
 0x3a9   :  { %v380_v55 = vadd.f32 %v804_v18, %v379_v54 }
 0x3aa   :  { %v603_v56 = vpop.f32.mrf.mxu1 }
 0x3ab   :  { %628 = vtanh.f32 %v380_v55  ;;  %v525_v58 = vmul.f32 -1.442695, %v380_v55 }
 0x3ad   :  { %630 = vpow2.f32 %v525_v58 }
 0x3b8   :  { %v629_v57 = vpop.eup %628 }
 0x3b9   :  { %392 = vrot.lane.b32.xlu1 %v629_v57, %s653_s24 }
 0x3ba   :  { %v631_v59 = vpop.eup %630 }
 0x3bb   :  { %v386_v60 = vadd.f32 1.0, %v631_v59 }
 0x3bd   :  { %632 = vrcp.f32 %v386_v60 }
 0x3ca   :  { %v633_v61 = vpop.eup %632 }
 0x3cb   :  { %v390_v0 = vmul.f32 %v633_v61, %v813_v31 }
 0x42b   :  { %v393_v62 = vpop.permute.xlu1 %392 }
 0x42c   :  { %v395_v63 = vmul.f32 %v633_v61, %v393_v62 }
 0x42e   :  { %397 = vrot.lane.b32.xlu0 %v395_v63, %s654_s3 }
 0x4a0   :  { %v398_v1 = vpop.permute.xlu0 %397 }
 0x4a1   :  { %v400_v2 = vadd.f32 %v398_v1, %v390_v0 }
 0x4a3   :  { %634 = vtanh.f32 %v400_v2 }
 0x4b0   :  { %v635_v3 = vpop.eup %634 }
 0x4b1   :  { %403 = vrot.lane.b32.xlu1 %v635_v3, %s653_s24 }
 0x523   :  { %v404_v4 = vpop.permute.xlu1 %403 }
 0x524   :  { %v406_v5 = vmul.f32 %v633_v61, %v404_v4 }
 0x526   :  { %408 = vrot.lane.b32.xlu0 %v406_v5, %s654_s3 }
 0x598   :  { %v409_v6 = vpop.permute.xlu0 %408 }
 0x599   :  { %613 = vmatmul.mubr.msk.f32.vlgmr.msra.gmra.mxu0 %vm231_vm4, %v409_v6 }
 0x659   :  { %v478_v7 = vpop.f32.mrf.mxu0 }
 0x65a   :  { %v479_v8 = vadd.f32 %v522_v50, %v478_v7 }
 0x65b   :  { %v614_v9 = vpop.f32.mrf.mxu0 }
 0x65c   :  { %482 = vst [vmem:[%s913_s6 + $0x8] sm:$0xff] %v479_v8 }
 0x65d   :  { %487 = vsyncpa [#allocation4], 1 }

</bundles_post_ra>
